<compile_context>
chip_gen: v7x
topology: tpu7x:2x2x1
jax: 0.10.0
libtpu: 0.0.40
codegen_flags: <defaults>
</compile_context>

<pallas_src>
import functools

import jax
import jax.numpy as jnp
from jax import lax
from jax.experimental import pallas as pl
from jax.experimental.pallas import tpu as pltpu

LANE = 128
SUBLANE = 8


def _dice_partial_kernel(pr_ref, gt_ref, out_ref, tp_acc, pr_acc, gt_acc, *,
                         steps_per_split, full_rows, rem_lanes,
                         valid_rows_ceil, gate_mask):
    s = pl.program_id(0)          # split axis ("parallel"; megacore on v7x)
    i = pl.program_id(1)          # reduction axis ("arbitrary")
    tr = pr_ref.shape[0]

    @pl.when(i == 0)
    def _():
        tp_acc[...] = jnp.zeros_like(tp_acc)
        pr_acc[...] = jnp.zeros_like(pr_acc)
        gt_acc[...] = jnp.zeros_like(gt_acc)

    def accumulate(masked, row_base=None):
        x = pr_ref[...].astype(jnp.float32)          # (tr, LANE)
        gt = gt_ref[...].astype(jnp.float32)
        # sigmoid(x) = 0.5 * (tanh(0.5 * x) + 1): a single EUP op per element.
        pr = 0.5 * (jnp.tanh(0.5 * x) + 1.0)
        if masked:
            # Row-space masking (no element-index multiply -> no int32
            # overflow even for multi-GiB inputs).
            r = lax.broadcasted_iota(jnp.int32, (tr, LANE), 0)
            l = lax.broadcasted_iota(jnp.int32, (tr, LANE), 1)
            g_row = row_base + r
            valid = (g_row < full_rows) | ((g_row == full_rows) & (l < rem_lanes))
            pr = jnp.where(valid, pr, 0.0)
            gt = jnp.where(valid, gt, 0.0)
        # Keep accumulators vreg-shaped: fold the tile onto an (8, 128) slab
        # with pure VPU adds.  The cross-lane/sublane reduce happens once,
        # outside the kernel, on the tiny partial-sum output.
        tp_acc[...] += (pr * gt).reshape(-1, SUBLANE, LANE).sum(axis=0)
        pr_acc[...] += pr.reshape(-1, SUBLANE, LANE).sum(axis=0)
        gt_acc[...] += gt.reshape(-1, SUBLANE, LANE).sum(axis=0)

    if not gate_mask:
        # Exact-fit grid: every tile is fully valid -> pure fast path.
        accumulate(masked=False)
    else:
        # Gate the masking work: only boundary tiles pay for iota/cmp/select;
        # tiles entirely past the valid range (padding or clamped duplicate
        # blocks) skip the accumulate altogether.
        block = s * steps_per_split + i        # unclamped logical block index
        row_base = block * tr

        @pl.when(row_base + tr <= full_rows)
        def _():
            accumulate(masked=False)

        @pl.when(jnp.logical_and(row_base + tr > full_rows,
                                 row_base < valid_rows_ceil))
        def _():
            accumulate(masked=True, row_base=row_base)

    @pl.when(i == pl.num_programs(1) - 1)
    def _():
        out_ref[0, 0] = tp_acc[...]
        out_ref[0, 1] = pr_acc[...]
        out_ref[0, 2] = gt_acc[...]


def _default_num_split():
    """2-way reduction split only on multi-TensorCore chips (v7x); else 1."""
    try:
        info = pltpu.get_tpu_info()
        for name in ("num_cores", "num_tensorcores", "tensorcores_per_chip",
                     "cores_per_chip", "num_cores_per_chip"):
            n = getattr(info, name, None)
            if isinstance(n, int) and n > 0:
                return min(2, n)
    except Exception:
        pass
    try:
        kind = jax.devices()[0].device_kind.lower()
        if "v7" in kind:
            return 2
    except Exception:
        pass
    return 1


def dice_loss(y_pr, y_gt, *, eps=1e-7, beta=1.0, tile_rows=4096, num_split=None):
    """Pallas implementation of DiceLoss.forward (sigmoid activation)."""
    assert y_pr.shape == y_gt.shape
    total = int(y_pr.size)

    # y_gt is a 0/1 mask: it may be passed as bf16 / int8 to cut HBM traffic
    # (exact for labels); the kernel casts to f32 in-register.  No wrapper-side
    # astype here (that would be an extra, un-hidden full pass over HBM).
    pr_flat = y_pr.reshape(-1)
    gt_flat = y_gt.reshape(-1)

    # Pad only to a whole number of (8, 128) vregs (at most 1023 elements, and
    # only when needed).  Pad *values* don't matter: in-kernel masking against
    # the true element count zeroes their contribution.
    chunk = SUBLANE * LANE
    padded = ((total + chunk - 1) // chunk) * chunk
    if padded != total:
        pr_flat = jnp.pad(pr_flat, (0, padded - total))
        gt_flat = jnp.pad(gt_flat, (0, padded - total))

    rows = padded // LANE                      # multiple of 8
    pr2 = pr_flat.reshape(rows, LANE)
    gt2 = gt_flat.reshape(rows, LANE)

    # ---- Grid geometry (all static Python ints). ----
    if num_split is None:
        num_split = _default_num_split()

    tile_rows = max(SUBLANE, (min(int(tile_rows), rows) // SUBLANE) * SUBLANE)
    nblocks = pl.cdiv(rows, tile_rows)
    num_split = max(1, min(int(num_split), nblocks))

    # Prefer a tile_rows for which num_split divides nblocks, so no block is
    # duplicated (re-read from HBM) by the clamped trailing index.
    if num_split > 1 and nblocks % num_split != 0:
        floor = max(SUBLANE, (tile_rows // 2 // SUBLANE) * SUBLANE)
        t = tile_rows
        while t >= floor:
            if pl.cdiv(rows, t) % num_split == 0:
                tile_rows = t
                nblocks = pl.cdiv(rows, t)
                break
            t -= SUBLANE

    steps_per_split = pl.cdiv(nblocks, num_split)
    grid_elems = num_split * steps_per_split * tile_rows * LANE
    gate_mask = grid_elems != total

    if num_split * steps_per_split == nblocks:
        def blk_idx(s, i):
            return s * steps_per_split + i
    else:
        # Uneven split: clamp trailing block indices in-bounds; the kernel
        # skips (via pl.when) any block whose unclamped index is out of range.
        def blk_idx(s, i):
            return jnp.minimum(s * steps_per_split + i, nblocks - 1)

    kernel = functools.partial(
        _dice_partial_kernel,
        steps_per_split=steps_per_split,
        full_rows=total // LANE,
        rem_lanes=total % LANE,
        valid_rows_ceil=pl.cdiv(total, LANE),
        gate_mask=gate_mask,
    )

    # VMEM budget: 2 inputs x 2 pipeline buffers x one block each (+ tiny
    # scratch/output).  Only raise the scoped limit above the conservative
    # v5e default (16 MiB) when actually needed.
    block_bytes = tile_rows * LANE * (pr2.dtype.itemsize + gt2.dtype.itemsize)
    vmem_needed = 2 * block_bytes + (1 << 20)
    cp_kwargs = dict(dimension_semantics=("parallel", "arbitrary"))
    if vmem_needed > (16 << 20):
        cp_kwargs["vmem_limit_bytes"] = int(min(vmem_needed + (4 << 20), 64 << 20))

    out_elems = num_split * 3 * SUBLANE * LANE
    bytes_in = (pr2.size * pr2.dtype.itemsize
                + gt2.size * gt2.dtype.itemsize)

    partials = pl.pallas_call(
        kernel,
        out_shape=jax.ShapeDtypeStruct((num_split, 3, SUBLANE, LANE),
                                       jnp.float32),
        grid_spec=pltpu.PrefetchScalarGridSpec(
            num_scalar_prefetch=0,
            grid=(num_split, steps_per_split),
            in_specs=[
                pl.BlockSpec((tile_rows, LANE), lambda s, i: (blk_idx(s, i), 0)),
                pl.BlockSpec((tile_rows, LANE), lambda s, i: (blk_idx(s, i), 0)),
            ],
            out_specs=pl.BlockSpec((1, 3, SUBLANE, LANE),
                                   lambda s, i: (s, 0, 0, 0)),
            scratch_shapes=[pltpu.VMEM((SUBLANE, LANE), jnp.float32)] * 3,
        ),
        compiler_params=pltpu.CompilerParams(**cp_kwargs),
        cost_estimate=pl.CostEstimate(
            flops=8 * total,
            transcendentals=total,
            bytes_accessed=bytes_in + out_elems * 4),
    )(pr2, gt2)

    # Tiny epilogue (fuses into one small XLA op): single cross-lane/sublane
    # reduce + the dice formula.
    sums = jnp.sum(partials, axis=(0, 2, 3))
    tp, sum_pr, sum_gt = sums[0], sums[1], sums[2]
    fp = sum_pr - tp
    fn = sum_gt - tp
    b2 = beta * beta
    score = ((1.0 + b2) * tp + eps) / ((1.0 + b2) * tp + b2 * fn + fp + eps)
    return 1.0 - score


def _dice_loss_ref(y_pr, y_gt, eps=1e-7, beta=1.0):
    pr = jax.nn.sigmoid(y_pr.astype(jnp.float32))
    gt = y_gt.astype(jnp.float32)
    tp = jnp.sum(pr * gt)
    fp = jnp.sum(pr) - tp
    fn = jnp.sum(gt) - tp
    b2 = beta * beta
    score = ((1.0 + b2) * tp + eps) / ((1.0 + b2) * tp + b2 * fn + fp + eps)
    return 1.0 - score


if __name__ == "__main__":
    key = jax.random.PRNGKey(0)
    k1, k2, k3, k4, k5, k6 = jax.random.split(key, 6)

    # NCHW, as the PyTorch module would receive from a segmentation head.
    N, C, H, W = 2, 4, 16, 16
    y_pr = jax.random.normal(k1, (N, C, H, W), dtype=jnp.float32)  # logits
    y_gt = (jax.random.uniform(k2, (N, C, H, W)) > 0.5).astype(jnp.float32)

    loss = jax.block_until_ready(dice_loss(y_pr, y_gt))
    ref = _dice_loss_ref(y_pr, y_gt)
    assert jnp.abs(loss - ref) < 1e-4, (loss, ref)

    # Ragged size + forced 2-way split: exercises the gated boundary-mask tile
    # and the unmasked interior fast path in the same call.
    y_pr2 = jax.random.normal(k3, (2, 3, 15, 17), dtype=jnp.float32)
    y_gt2 = (jax.random.uniform(k4, (2, 3, 15, 17)) > 0.5).astype(jnp.float32)
    loss2 = jax.block_until_ready(dice_loss(y_pr2, y_gt2, tile_rows=8, num_split=2))
    ref2 = _dice_loss_ref(y_pr2, y_gt2)
    assert jnp.abs(loss2 - ref2) < 1e-4, (loss2, ref2)

    # Odd block count with a 2-way split: exercises the clamped duplicate
    # block that the kernel skips entirely.  gt passed as bf16 (exact 0/1) to
    # exercise the narrow-label dtype path.
    y_pr3 = jax.random.normal(k5, (3, 8, 128), dtype=jnp.float32)
    y_gt3 = (jax.random.uniform(k6, (3, 8, 128)) > 0.5).astype(jnp.bfloat16)
    loss3 = jax.block_until_ready(dice_loss(y_pr3, y_gt3, tile_rows=8, num_split=2))
    ref3 = _dice_loss_ref(y_pr3, y_gt3)
    assert jnp.abs(loss3 - ref3) < 1e-4, (loss3, ref3)

    print("KERNEL_OK")
</pallas_src>

<mosaic_0001>
module attributes {stable_mosaic.version = 11 : i64} {
  func.func @_dice_partial_kernel(%arg0: i32, %arg1: i32, %arg2: memref<16x128xf32, #tpu.memory_space<vmem>>, %arg3: memref<16x128xf32, #tpu.memory_space<vmem>>, %arg4: memref<1x3x8x128xf32, #tpu.memory_space<vmem>>, %arg5: memref<8x128xf32, #tpu.memory_space<vmem>>, %arg6: memref<8x128xf32, #tpu.memory_space<vmem>>, %arg7: memref<8x128xf32, #tpu.memory_space<vmem>>) attributes {dimension_semantics = [#tpu.dimension_semantics<parallel>, #tpu.dimension_semantics<arbitrary>], iteration_bounds = array<i64: 1, 1>, scalar_prefetch = 0 : i64, scratch_operands = 3 : i64, tpu.core_type = #tpu.core_type<tc>, window_params = [{transform_indices = @transform_0, window_bounds = array<i64: 16, 128>}, {transform_indices = @transform_1, window_bounds = array<i64: 16, 128>}, {transform_indices = @transform_2, window_bounds = array<i64: 1, 3, 8, 128>}]} {
    %c0_i32 = arith.constant 0 : i32
    %0 = arith.cmpi eq, %arg1, %c0_i32 : i32
    %1 = arith.extui %0 : i1 to i32
    %c0_i32_0 = arith.constant 0 : i32
    %2 = arith.cmpi ne, %1, %c0_i32_0 : i32
    scf.if %2 {
      %cst_23 = arith.constant 0.000000e+00 : f32
      %31 = vector.broadcast %cst_23 : f32 to vector<8x128xf32>
      %c0_24 = arith.constant 0 : index
      %c0_25 = arith.constant 0 : index
      %32 = vector.load %arg5[%c0_24, %c0_25] : memref<8x128xf32, #tpu.memory_space<vmem>>, vector<8x128xf32>
      tpu.vector_store %arg5[%c0_24, %c0_25], %31 {strides = array<i32>} : memref<8x128xf32, #tpu.memory_space<vmem>>, vector<8x128xf32>,
      %cst_26 = arith.constant 0.000000e+00 : f32
      %33 = vector.broadcast %cst_26 : f32 to vector<8x128xf32>
      %c0_27 = arith.constant 0 : index
      %c0_28 = arith.constant 0 : index
      %34 = vector.load %arg6[%c0_27, %c0_28] : memref<8x128xf32, #tpu.memory_space<vmem>>, vector<8x128xf32>
      tpu.vector_store %arg6[%c0_27, %c0_28], %33 {strides = array<i32>} : memref<8x128xf32, #tpu.memory_space<vmem>>, vector<8x128xf32>,
      %cst_29 = arith.constant 0.000000e+00 : f32
      %35 = vector.broadcast %cst_29 : f32 to vector<8x128xf32>
      %c0_30 = arith.constant 0 : index
      %c0_31 = arith.constant 0 : index
      %36 = vector.load %arg7[%c0_30, %c0_31] : memref<8x128xf32, #tpu.memory_space<vmem>>, vector<8x128xf32>
      tpu.vector_store %arg7[%c0_30, %c0_31], %35 {strides = array<i32>} : memref<8x128xf32, #tpu.memory_space<vmem>>, vector<8x128xf32>,
    } else {
    }
    %c0 = arith.constant 0 : index
    %c0_1 = arith.constant 0 : index
    %3 = vector.load %arg2[%c0, %c0_1] : memref<16x128xf32, #tpu.memory_space<vmem>>, vector<16x128xf32>
    %c0_2 = arith.constant 0 : index
    %c0_3 = arith.constant 0 : index
    %4 = vector.load %arg3[%c0_2, %c0_3] : memref<16x128xf32, #tpu.memory_space<vmem>>, vector<16x128xf32>
    %cst = arith.constant 5.000000e-01 : f32
    %5 = vector.broadcast %cst : f32 to vector<16x128xf32>
    %6 = arith.mulf %5, %3 : vector<16x128xf32>
    %7 = math.tanh %6 : vector<16x128xf32>
    %cst_4 = arith.constant 1.000000e+00 : f32
    %8 = vector.broadcast %cst_4 : f32 to vector<16x128xf32>
    %9 = arith.addf %7, %8 : vector<16x128xf32>
    %cst_5 = arith.constant 5.000000e-01 : f32
    %10 = vector.broadcast %cst_5 : f32 to vector<16x128xf32>
    %11 = arith.mulf %10, %9 : vector<16x128xf32>
    %c0_6 = arith.constant 0 : index
    %c0_7 = arith.constant 0 : index
    %12 = vector.load %arg5[%c0_6, %c0_7] : memref<8x128xf32, #tpu.memory_space<vmem>>, vector<8x128xf32>
    %13 = arith.mulf %11, %4 : vector<16x128xf32>
    %14 = vector.shape_cast %13 : vector<16x128xf32> to vector<2x8x128xf32>
    %cst_8 = arith.constant dense<0.000000e+00> : vector<8x128xf32>
    %15 = vector.multi_reduction <add>, %14, %cst_8 [0] : vector<2x8x128xf32> to vector<8x128xf32>
    %16 = arith.addf %12, %15 : vector<8x128xf32>
    %c0_9 = arith.constant 0 : index
    %c0_10 = arith.constant 0 : index
    %17 = vector.load %arg5[%c0_9, %c0_10] : memref<8x128xf32, #tpu.memory_space<vmem>>, vector<8x128xf32>
    tpu.vector_store %arg5[%c0_9, %c0_10], %16 {strides = array<i32>} : memref<8x128xf32, #tpu.memory_space<vmem>>, vector<8x128xf32>,
    %c0_11 = arith.constant 0 : index
    %c0_12 = arith.constant 0 : index
    %18 = vector.load %arg6[%c0_11, %c0_12] : memref<8x128xf32, #tpu.memory_space<vmem>>, vector<8x128xf32>
    %19 = vector.shape_cast %11 : vector<16x128xf32> to vector<2x8x128xf32>
    %cst_13 = arith.constant dense<0.000000e+00> : vector<8x128xf32>
    %20 = vector.multi_reduction <add>, %19, %cst_13 [0] : vector<2x8x128xf32> to vector<8x128xf32>
    %21 = arith.addf %18, %20 : vector<8x128xf32>
    %c0_14 = arith.constant 0 : index
    %c0_15 = arith.constant 0 : index
    %22 = vector.load %arg6[%c0_14, %c0_15] : memref<8x128xf32, #tpu.memory_space<vmem>>, vector<8x128xf32>
    tpu.vector_store %arg6[%c0_14, %c0_15], %21 {strides = array<i32>} : memref<8x128xf32, #tpu.memory_space<vmem>>, vector<8x128xf32>,
    %c0_16 = arith.constant 0 : index
    %c0_17 = arith.constant 0 : index
    %23 = vector.load %arg7[%c0_16, %c0_17] : memref<8x128xf32, #tpu.memory_space<vmem>>, vector<8x128xf32>
    %24 = vector.shape_cast %4 : vector<16x128xf32> to vector<2x8x128xf32>
    %cst_18 = arith.constant dense<0.000000e+00> : vector<8x128xf32>
    %25 = vector.multi_reduction <add>, %24, %cst_18 [0] : vector<2x8x128xf32> to vector<8x128xf32>
    %26 = arith.addf %23, %25 : vector<8x128xf32>
    %c0_19 = arith.constant 0 : index
    %c0_20 = arith.constant 0 : index
    %27 = vector.load %arg7[%c0_19, %c0_20] : memref<8x128xf32, #tpu.memory_space<vmem>>, vector<8x128xf32>
    tpu.vector_store %arg7[%c0_19, %c0_20], %26 {strides = array<i32>} : memref<8x128xf32, #tpu.memory_space<vmem>>, vector<8x128xf32>,
    %c0_i32_21 = arith.constant 0 : i32
    %28 = arith.cmpi eq, %arg1, %c0_i32_21 : i32
    %29 = arith.extui %28 : i1 to i32
    %c0_i32_22 = arith.constant 0 : i32
    %30 = arith.cmpi ne, %29, %c0_i32_22 : i32
    scf.if %30 {
      %c0_23 = arith.constant 0 : index
      %c0_24 = arith.constant 0 : index
      %31 = vector.load %arg5[%c0_23, %c0_24] : memref<8x128xf32, #tpu.memory_space<vmem>>, vector<8x128xf32>
      %c0_25 = arith.constant 0 : index
      %c0_26 = arith.constant 0 : index
      %c0_27 = arith.constant 0 : index
      %c0_28 = arith.constant 0 : index
      %32 = vector.load %arg4[%c0_25, %c0_26, %c0_27, %c0_28] : memref<1x3x8x128xf32, #tpu.memory_space<vmem>>, vector<1x1x8x128xf32>
      %33 = vector.shape_cast %32 : vector<1x1x8x128xf32> to vector<8x128xf32>
      %34 = vector.shape_cast %31 : vector<8x128xf32> to vector<1x1x8x128xf32>
      tpu.vector_store %arg4[%c0_25, %c0_26, %c0_27, %c0_28], %34 {strides = array<i32>} : memref<1x3x8x128xf32, #tpu.memory_space<vmem>>, vector<1x1x8x128xf32>,
      %c0_29 = arith.constant 0 : index
      %c0_30 = arith.constant 0 : index
      %35 = vector.load %arg6[%c0_29, %c0_30] : memref<8x128xf32, #tpu.memory_space<vmem>>, vector<8x128xf32>
      %c0_31 = arith.constant 0 : index
      %c1 = arith.constant 1 : index
      %c0_32 = arith.constant 0 : index
      %c0_33 = arith.constant 0 : index
      %36 = vector.load %arg4[%c0_31, %c1, %c0_32, %c0_33] : memref<1x3x8x128xf32, #tpu.memory_space<vmem>>, vector<1x1x8x128xf32>
      %37 = vector.shape_cast %36 : vector<1x1x8x128xf32> to vector<8x128xf32>
      %38 = vector.shape_cast %35 : vector<8x128xf32> to vector<1x1x8x128xf32>
      tpu.vector_store %arg4[%c0_31, %c1, %c0_32, %c0_33], %38 {strides = array<i32>} : memref<1x3x8x128xf32, #tpu.memory_space<vmem>>, vector<1x1x8x128xf32>,
      %c0_34 = arith.constant 0 : index
      %c0_35 = arith.constant 0 : index
      %39 = vector.load %arg7[%c0_34, %c0_35] : memref<8x128xf32, #tpu.memory_space<vmem>>, vector<8x128xf32>
      %c0_36 = arith.constant 0 : index
      %c2 = arith.constant 2 : index
      %c0_37 = arith.constant 0 : index
      %c0_38 = arith.constant 0 : index
      %40 = vector.load %arg4[%c0_36, %c2, %c0_37, %c0_38] : memref<1x3x8x128xf32, #tpu.memory_space<vmem>>, vector<1x1x8x128xf32>
      %41 = vector.shape_cast %40 : vector<1x1x8x128xf32> to vector<8x128xf32>
      %42 = vector.shape_cast %39 : vector<8x128xf32> to vector<1x1x8x128xf32>
      tpu.vector_store %arg4[%c0_36, %c2, %c0_37, %c0_38], %42 {strides = array<i32>} : memref<1x3x8x128xf32, #tpu.memory_space<vmem>>, vector<1x1x8x128xf32>,
    } else {
    }
    return
  }
  func.func @transform_0(%arg0: i32, %arg1: i32) -> (i32, i32) {
    %c1_i32 = arith.constant 1 : i32
    %0 = arith.muli %arg0, %c1_i32 : i32
    %1 = arith.addi %0, %arg1 : i32
    %c0_i32 = arith.constant 0 : i32
    %c0_i32_0 = arith.constant 0 : i32
    return %1, %c0_i32 : i32, i32
  }
  func.func @transform_1(%arg0: i32, %arg1: i32) -> (i32, i32) {
    %c1_i32 = arith.constant 1 : i32
    %0 = arith.muli %arg0, %c1_i32 : i32
    %1 = arith.addi %0, %arg1 : i32
    %c0_i32 = arith.constant 0 : i32
    %c0_i32_0 = arith.constant 0 : i32
    return %1, %c0_i32 : i32, i32
  }
  func.func @transform_2(%arg0: i32, %arg1: i32) -> (i32, i32, i32, i32) {
    %c0_i32 = arith.constant 0 : i32
    %c0_i32_0 = arith.constant 0 : i32
    %c0_i32_1 = arith.constant 0 : i32
    %c0_i32_2 = arith.constant 0 : i32
    return %arg0, %c0_i32, %c0_i32_0, %c0_i32_1 : i32, i32, i32, i32
  }
}

</mosaic_0001>

<bundles_post_ra>
// kernel: tpu_custom_call.1
= control target key start
LH: loop header
LB: loop body
LE: loop exit
PB: predicated region body
PF: predicated region fallthrough
CT: control target
= control target key end

     0   :  { %7 = vsyncpa [#allocation6], 0  ;;  %s260_s0 = inlined_call_operand.hbm [shape: f32[16,128], index: 0, kind: input, shape index: {}]   ;;  %s261_s1 = inlined_call_operand.hbm [shape: f32[16,128], index: 1, kind: input, shape index: {}]   ;;  %s262_s2 = inlined_call_operand.hbm [shape: f32[1,3,8,128], index: 2, kind: output, shape index: {}]  }
   0x1   :  { %8 = vsyncpa [#allocation9], 0 }
   0x2   :  { %9 = vsyncpa [#allocation7], 0  ;;  %s195_s9 = smov [#allocation5]   ;;  %s123_s13 = scalar_lea.hbm %s260_s0, 256 }
   0x3   :  { %s19_s10 = sshll.u32 %s195_s9, 4  ;;  %p124_p0 = scmp.ne.s32.totalorder %s260_s0, %s123_s13  ;;  %s20_s10 = int_to_ptr.vmem [resolvable:$true] %s19_s10 }
   0x4   :  { %p127_p1 = scmp.lt.u32.totalorder %s123_s13, %s260_s0 }
   0x6   :  { %p129_p2 = pnand %p127_p1, %p124_p0 }
   0x8   :  { %132 = shalt.err (!%p129_p2)
}
   0x9   :  { %s133_s18 = scalar_lea.vmem %s20_s10, 256  ;;  %p138_p4 = scmp.lt.s32.totalorder %s20_s10, %s20_s10 }
   0xa   :  { %p134_p3 = scmp.ne.s32.totalorder %s20_s10, %s133_s18  ;;  %p139_p5 = scmp.lt.s32.totalorder %s133_s18, %s133_s18 }
   0xc   :  { %p140_p6 = por %p139_p5, %p138_p4 }
   0xe   :  { %p141_p7 = pnand %p140_p6, %p134_p3 }
  0x10   :  { %144 = shalt.err (!%p141_p7)
}
  0x11   :  { %s196_s19 = smov 128   ;;  %s197_s20 = smov 8  }
  0x12   :  { %25 = dma.hbm_to_vmem [thread:$0]  %s260_s0, 256, %s20_s10, [#allocation6], %s196_s19, %s196_s19, %s197_s20  }
  0x13   :  { %s198_s23 = smov [#allocation8]   ;;  %s145_s27 = scalar_lea.hbm %s261_s1, 256 }
  0x14   :  { %s35_s24 = sshll.u32 %s198_s23, 4  ;;  %p146_p8 = scmp.ne.s32.totalorder %s261_s1, %s145_s27  ;;  %s36_s24 = int_to_ptr.vmem [resolvable:$true] %s35_s24 }
  0x15   :  { %p149_p9 = scmp.lt.u32.totalorder %s145_s27, %s261_s1 }
  0x17   :  { %p151_p10 = pnand %p149_p9, %p146_p8 }
  0x19   :  { %154 = shalt.err (!%p151_p10)
}
  0x1a   :  { %s155_s4 = scalar_lea.vmem %s36_s24, 256  ;;  %p160_p12 = scmp.lt.s32.totalorder %s36_s24, %s36_s24 }
  0x1b   :  { %p156_p11 = scmp.ne.s32.totalorder %s36_s24, %s155_s4  ;;  %p161_p13 = scmp.lt.s32.totalorder %s155_s4, %s155_s4 }
  0x1d   :  { %p162_p0 = por %p161_p13, %p160_p12 }
  0x1f   :  { %p163_p1 = pnand %p162_p0, %p156_p11 }
  0x21   :  { %166 = shalt.err (!%p163_p1)
}
  0x22   :  { %41 = dma.hbm_to_vmem [thread:$0]  %s261_s1, 256, %s36_s24, [#allocation9], %s196_s19, %s196_s19, %s197_s20  }
  0x23   :  { %189 = dma.done.wait [#allocation6], 256  }
  0x24   :  { %190 = vsyncadd [#allocation6], 4294967040 }
  0x25   :  { %191 = dma.done.wait [#allocation9], 256  }
  0x26   :  { %192 = vsyncadd [#allocation9], 4294967040  ;;  %v59_v0 = vld [vmem:[#allocation5] sm:$0xff]  ;;  %v60_v1 = vld [vmem:[#allocation5 + $0x8] sm:$0xff]  ;;  %s199_s1 = smov [#allocation10]  }
  0x27   :  { %v61_v2 = vld [vmem:[#allocation8] sm:$0xff]  ;;  %v62_v3 = vld [vmem:[#allocation8 + $0x8] sm:$0xff]  ;;  %v63_v4 = vmul.f32 0.5, %v59_v0  ;;  %v64_v5 = vmul.f32 0.5, %v60_v1  ;;  %s101_s6 = sshll.u32 %s199_s1, 4  ;;  %s102_s6 = int_to_ptr.vmem [resolvable:$true] %s101_s6 }
  0x28   :  { %v82_v6 = vadd.f32 %v62_v3, %v61_v2  ;;  %s167_s7 = scalar_lea.vmem %s102_s6, 384  ;;  %p172_p3 = scmp.lt.s32.totalorder %s102_s6, %s102_s6 }
  0x29   :  { %119 = vtanh.f32 %v63_v4  ;;  %p168_p2 = scmp.ne.s32.totalorder %s102_s6, %s167_s7  ;;  %p173_p4 = scmp.lt.s32.totalorder %s167_s7, %s167_s7 }
  0x2a   :  { %121 = vtanh.f32 %v64_v5  ;;  %95 = vst [vmem:[#allocation10 + $0x10] sm:$0xff] %v82_v6 }
  0x2b   :  { %p174_p5 = por %p173_p4, %p172_p3 }
  0x2d   :  { %p175_p6 = pnand %p174_p5, %p168_p2 }
  0x33   :  { %v120_v7 = vpop.eup %119 }
  0x34   :  { %v122_v8 = vpop.eup %121  ;;  %v67_v9 = vadd.f32 1.0, %v120_v7 }
  0x35   :  { %v68_v10 = vadd.f32 1.0, %v122_v8 }
  0x36   :  { %v69_v11 = vmul.f32 0.5, %v67_v9 }
  0x37   :  { %v70_v12 = vmul.f32 0.5, %v68_v10 }
  0x38   :  { %v72_v13 = vmul.f32 %v69_v11, %v61_v2 }
  0x39   :  { %v73_v14 = vmul.f32 %v70_v12, %v62_v3  ;;  %v78_v15 = vadd.f32 %v70_v12, %v69_v11 }
  0x3b   :  { %v74_v16 = vadd.f32 %v73_v14, %v72_v13  ;;  %92 = vst [vmem:[#allocation10 + $0x8] sm:$0xff] %v78_v15 }
  0x3d   :  { %89 = vst [vmem:[#allocation10] sm:$0xff] %v74_v16 }
  0x3e   :  { %178 = shalt.err (!%p175_p6)
}
  0x3f   :  { %s179_s10 = scalar_lea.hbm %s262_s2, 384 }
  0x40   :  { %p180_p7 = scmp.ne.s32.totalorder %s262_s2, %s179_s10  ;;  %p183_p8 = scmp.lt.u32.totalorder %s179_s10, %s262_s2 }
  0x42   :  { %p185_p9 = pnand %p183_p8, %p180_p7 }
  0x44   :  { %188 = shalt.err (!%p185_p9)
}
  0x45   :  { %107 = dma.vmem_to_hbm [thread:$0]  %s102_s6, 384, %s262_s2, [#allocation7], %s196_s19, %s196_s19, %s197_s20  }
  0x46   :  { %193 = dma.done.wait [#allocation7], 384  }
  0x47   :  { %194 = vsyncadd [#allocation7], 4294966912 }
  0x48   :  { %111 = vsyncpa [#allocation6], 1 }
  0x49   :  { %112 = vsyncpa [#allocation9], 1 }
  0x4a   :  { %113 = vsyncpa [#allocation7], 1 }

</bundles_post_ra>
